<compile_context>
chip_gen: v7x
topology: tpu7x:2x2x1
jax: 0.10.0
libtpu: 0.0.40
codegen_flags: <defaults>
</compile_context>

<pallas_src>
import functools

import jax
import jax.numpy as jnp
from jax.experimental import pallas as pl
from jax.experimental.pallas import tpu as pltpu

_LANES = 128


def _vg_loss_kernel(box_xyxy: bool, tile_rows: int, src_ref, tgt_ref, out_ref):
    """One (layer, sublane-chunk) grid step.

    src_ref : (1, 4, TR, 128)      predicted boxes, coordinate-planar, native dtype.
    tgt_ref : (4, rows_pad, 128)   broadcast gt boxes, resident in VMEM (constant
                                   block index), sliced per chunk in-kernel.
    out_ref : (1, 2, 128)          per-lane partial sums [l1, 1-giou]; resident
                                   across the chunk axis (accumulator).
    """
    c = pl.program_id(1)

    @pl.when(c == 0)
    def _init():
        out_ref[...] = jnp.zeros_like(out_ref)

    src = src_ref[0].astype(jnp.float32)                               # (4, TR, 128)
    start = pl.multiple_of(c * tile_rows, tile_rows)
    tgt = tgt_ref[:, pl.ds(start, tile_rows), :].astype(jnp.float32)   # (4, TR, 128)

    # ---- L1 regression loss on the raw parametrization ----
    diff = jnp.abs(src - tgt)
    l1_rows = diff[0] + diff[1] + diff[2] + diff[3]                    # (TR, 128)

    # ---- GIoU loss ----
    if box_xyxy:
        sx0, sy0, sx1, sy1 = src[0], src[1], src[2], src[3]
        tx0, ty0, tx1, ty1 = tgt[0], tgt[1], tgt[2], tgt[3]
    else:
        sx0, sx1 = src[0] - 0.5 * src[2], src[0] + 0.5 * src[2]
        sy0, sy1 = src[1] - 0.5 * src[3], src[1] + 0.5 * src[3]
        tx0, tx1 = tgt[0] - 0.5 * tgt[2], tgt[0] + 0.5 * tgt[2]
        ty0, ty1 = tgt[1] - 0.5 * tgt[3], tgt[1] + 0.5 * tgt[3]

    area_s = (sx1 - sx0) * (sy1 - sy0)
    area_t = (tx1 - tx0) * (ty1 - ty0)

    iw = jnp.maximum(jnp.minimum(sx1, tx1) - jnp.maximum(sx0, tx0), 0.0)
    ih = jnp.maximum(jnp.minimum(sy1, ty1) - jnp.maximum(sy0, ty0), 0.0)
    inter = iw * ih
    union = area_s + area_t - inter

    area_c = (jnp.maximum(sx1, tx1) - jnp.minimum(sx0, tx0)) * \
             (jnp.maximum(sy1, ty1) - jnp.minimum(sy0, ty0))

    # Padded lanes hold identical positive-area dummy boxes (pred == gt), so
    # 1 - giou == 0 and l1 == 0 there with no masking. Real degenerate boxes
    # behave exactly like the PyTorch reference (no epsilon).
    giou = inter / union - (area_c - union) / area_c
    giou_rows = 1.0 - giou                                             # (TR, 128)

    # Single (2, 128) read-modify-write into the VMEM-resident output block.
    partial = jnp.concatenate(
        [jnp.sum(l1_rows, axis=0, keepdims=True),
         jnp.sum(giou_rows, axis=0, keepdims=True)], axis=0)           # (2, 128)
    out_ref[...] += partial[None]


def _round_up(x, m):
    return (x + m - 1) // m * m


@functools.partial(jax.jit, static_argnames=("box_xyxy", "max_rows_per_chunk"))
def vg_box_losses(pred_layers, gt_boxes, box_xyxy=False, max_rows_per_chunk=512):
    """Fused L1 / (1 - GIoU) sums for all decoder layers.

    pred_layers : list/tuple of (B, Q, 4) arrays (main output + aux outputs).
    gt_boxes    : (B, 4).
    Returns (l1_sums, giou_sums), each (L,) f32 (un-normalized sums).
    """
    pred_layers = list(pred_layers)
    num_layers = len(pred_layers)
    B, Q, _ = pred_layers[0].shape
    n = B * Q

    rows = -(-n // _LANES)                                   # ceil(N / 128) sublanes
    tile_rows = _round_up(min(rows, max_rows_per_chunk), 8)  # sublane-aligned chunk
    rows_pad = _round_up(rows, tile_rows)
    num_chunks = rows_pad // tile_rows
    n_pad = rows_pad * _LANES

    src_dtype = pred_layers[0].dtype
    tgt_dtype = gt_boxes.dtype

    # Predictions: coordinate-planar, lane-dense (L, 4, rows_pad, 128), native dtype.
    # (Under jit this stack/transpose/pad/reshape is one XLA copy fusion.)
    src = jnp.stack([p.reshape(n, 4) for p in pred_layers], axis=0)    # (L, N, 4)
    src = jnp.swapaxes(src, 1, 2)                                      # (L, 4, N)

    # Target broadcast built once, shared by all layers via a constant block index.
    tgt = jnp.broadcast_to(gt_boxes[:, None, :], (B, Q, 4)).reshape(n, 4).T  # (4, N)

    # Pad with an identical positive-area dummy box in pred AND gt so padded
    # lanes contribute exactly zero to both losses (no in-kernel mask needed).
    pad_n = n_pad - n
    if pad_n:
        pad_vals = [0.0, 0.0, 1.0, 1.0] if box_xyxy else [0.5, 0.5, 1.0, 1.0]
        pad_src = jnp.broadcast_to(
            jnp.array(pad_vals, src_dtype)[None, :, None], (num_layers, 4, pad_n))
        pad_tgt = jnp.broadcast_to(
            jnp.array(pad_vals, tgt_dtype)[:, None], (4, pad_n))
        src = jnp.concatenate([src, pad_src], axis=-1)
        tgt = jnp.concatenate([tgt, pad_tgt], axis=-1)

    src = src.reshape(num_layers, 4, rows_pad, _LANES)
    tgt = tgt.reshape(4, rows_pad, _LANES)

    kernel = functools.partial(_vg_loss_kernel, box_xyxy, tile_rows)

    # VMEM budget: double-buffered src block + full resident tgt + ~20 f32
    # full-tile temporaries, floored at 16 MiB (safe on v7x's 64 MiB VMEM).
    src_block_bytes = 4 * tile_rows * _LANES * src.dtype.itemsize
    tgt_bytes = tgt.size * tgt.dtype.itemsize
    f32_temps = 20 * tile_rows * _LANES * 4
    vmem_limit = int(min(
        48 * 2**20,
        max(16 * 2**20, 2 * src_block_bytes + tgt_bytes + f32_temps + (2 << 20))))

    cost = pl.CostEstimate(
        flops=int(45 * n_pad * num_layers),
        transcendentals=0,
        bytes_accessed=int(src.size * src.dtype.itemsize
                           + tgt.size * tgt.dtype.itemsize
                           + num_layers * 2 * _LANES * 4),
    )

    partial_sums = pl.pallas_call(
        kernel,
        out_shape=jax.ShapeDtypeStruct((num_layers, 2, _LANES), jnp.float32),
        grid=(num_layers, num_chunks),
        in_specs=[
            pl.BlockSpec((1, 4, tile_rows, _LANES), lambda l, c: (l, 0, c, 0)),
            # Constant block index -> gt DMA'd once and kept VMEM-resident.
            pl.BlockSpec((4, rows_pad, _LANES), lambda l, c: (0, 0, 0)),
        ],
        out_specs=pl.BlockSpec((1, 2, _LANES), lambda l, c: (l, 0, 0)),
        compiler_params=pltpu.CompilerParams(
            dimension_semantics=("parallel", "arbitrary"),
            vmem_limit_bytes=vmem_limit,
        ),
        cost_estimate=cost,
    )(src, tgt)

    sums = jnp.sum(partial_sums, axis=-1)        # (L, 2): final 128-lane reduction
    return sums[:, 0], sums[:, 1]


class VGCriterionPallas:
    """JAX/Pallas re-implementation of SARVG's VGCriterion forward."""

    def __init__(self, weight_dict, loss_loc="loss_boxes", box_xyxy=False):
        assert loss_loc == "loss_boxes"
        self.weight_dict = weight_dict
        self.box_xyxy = box_xyxy

    def __call__(self, outputs, targets):
        gt_boxes = targets["bbox"]             # (B, 4)
        pred_boxes = outputs["pred_boxes"]     # (B, Q, 4)
        B, Q, _ = pred_boxes.shape
        # avg_across_gpus on a single device: clamp(B*Q / 1, min=1)
        # TODO(synk): under data parallelism divide by the all-reduced global count.
        num_pos = max(float(B * Q), 1.0)

        aux = outputs.get("aux_outputs", [])
        layers = [pred_boxes] + [a["pred_boxes"] for a in aux]

        l1_sums, giou_sums = vg_box_losses(layers, gt_boxes, box_xyxy=self.box_xyxy)
        l1 = l1_sums / num_pos
        giou = giou_sums / num_pos

        losses = {"l1": l1[0], "giou": giou[0]}
        for i in range(len(aux)):
            losses[f"l1_{i}"] = l1[i + 1]
            losses[f"giou_{i}"] = giou[i + 1]
        return losses


# ---- pure-JAX reference (for correctness check) ----
def _ref_losses(pred, gt, box_xyxy, num_pos):
    B, Q, _ = pred.shape
    src = pred.reshape(-1, 4)
    tgt = jnp.broadcast_to(gt[:, None, :], (B, Q, 4)).reshape(-1, 4)
    l1 = jnp.sum(jnp.abs(src - tgt)) / num_pos
    if not box_xyxy:
        def cxcywh_to_xyxy(b):
            cx, cy, w, h = b[:, 0], b[:, 1], b[:, 2], b[:, 3]
            return jnp.stack([cx - w / 2, cy - h / 2, cx + w / 2, cy + h / 2], -1)
        src = cxcywh_to_xyxy(src)
        tgt = cxcywh_to_xyxy(tgt)
    a1 = (src[:, 2] - src[:, 0]) * (src[:, 3] - src[:, 1])
    a2 = (tgt[:, 2] - tgt[:, 0]) * (tgt[:, 3] - tgt[:, 1])
    lt = jnp.maximum(src[:, :2], tgt[:, :2])
    rb = jnp.minimum(src[:, 2:], tgt[:, 2:])
    wh = jnp.maximum(rb - lt, 0.0)
    inter = wh[:, 0] * wh[:, 1]
    union = a1 + a2 - inter
    iou = inter / union
    clt = jnp.minimum(src[:, :2], tgt[:, :2])
    crb = jnp.maximum(src[:, 2:], tgt[:, 2:])
    cwh = crb - clt
    area_c = cwh[:, 0] * cwh[:, 1]
    giou = iou - (area_c - union) / area_c
    return {"l1": l1, "giou": jnp.sum(1.0 - giou) / num_pos}


def _cxcywh_to_xyxy_np(b):
    cx, cy, w, h = b[..., 0], b[..., 1], b[..., 2], b[..., 3]
    return jnp.stack([cx - w / 2, cy - h / 2, cx + w / 2, cy + h / 2], axis=-1)


if __name__ == "__main__":
    key = jax.random.PRNGKey(0)
    k1, k2, k3, k4 = jax.random.split(key, 4)

    B, Q = 2, 8
    # boxes in cxcywh, generated so that w, h > 0 and coords in (0, 1)
    pred_boxes = jax.nn.sigmoid(jax.random.normal(k1, (B, Q, 4), jnp.float32))
    aux_pred_boxes = jax.nn.sigmoid(jax.random.normal(k2, (B, Q, 4), jnp.float32))
    gt_boxes = jax.nn.sigmoid(jax.random.normal(k3, (B, 4), jnp.float32))

    outputs = {
        "pred_boxes": pred_boxes,
        "aux_outputs": [{"pred_boxes": aux_pred_boxes}],
    }
    targets = {"bbox": gt_boxes}

    criterion = VGCriterionPallas(
        weight_dict={"l1": 5.0, "giou": 2.0}, loss_loc="loss_boxes", box_xyxy=False
    )
    losses = criterion(outputs, targets)
    losses = jax.tree_util.tree_map(jax.block_until_ready, losses)

    # --- check 1: main + aux vs pure-JAX reference (cxcywh path) ---
    num_pos = float(B * Q)
    ref_main = _ref_losses(pred_boxes, gt_boxes, False, num_pos)
    ref_aux = _ref_losses(aux_pred_boxes, gt_boxes, False, num_pos)
    ref = dict(ref_main)
    ref.update({k + "_0": v for k, v in ref_aux.items()})
    for k in losses:
        assert jnp.allclose(losses[k], ref[k], rtol=1e-5, atol=1e-5), (
            k, losses[k], ref[k])

    # --- check 2: box_xyxy=True path ---
    pred_xyxy = _cxcywh_to_xyxy_np(pred_boxes)
    gt_xyxy = _cxcywh_to_xyxy_np(gt_boxes)
    crit_xyxy = VGCriterionPallas(
        weight_dict={"l1": 5.0, "giou": 2.0}, loss_loc="loss_boxes", box_xyxy=True
    )
    losses_xyxy = crit_xyxy({"pred_boxes": pred_xyxy}, {"bbox": gt_xyxy})
    losses_xyxy = jax.tree_util.tree_map(jax.block_until_ready, losses_xyxy)
    ref_xyxy = _ref_losses(pred_xyxy, gt_xyxy, True, num_pos)
    for k in losses_xyxy:
        assert jnp.allclose(losses_xyxy[k], ref_xyxy[k], rtol=1e-5, atol=1e-5), (
            k, losses_xyxy[k], ref_xyxy[k])

    # --- check 3: multi-chunk reduction path (small chunk, resident gt slicing) ---
    Q2 = 600
    pred2 = jax.nn.sigmoid(jax.random.normal(k4, (B, Q2, 4), jnp.float32))
    l1_s, gi_s = vg_box_losses([pred2], gt_boxes, box_xyxy=False,
                               max_rows_per_chunk=8)
    l1_s = jax.block_until_ready(l1_s)
    np2 = float(B * Q2)
    ref2 = _ref_losses(pred2, gt_boxes, False, np2)
    assert jnp.allclose(l1_s[0] / np2, ref2["l1"], rtol=1e-5, atol=1e-5)
    assert jnp.allclose(gi_s[0] / np2, ref2["giou"], rtol=1e-5, atol=1e-5)

    print("KERNEL_OK")
</pallas_src>

<mosaic_0001>
module attributes {stable_mosaic.version = 11 : i64} {
  func.func @_vg_loss_kernel(%arg0: i32, %arg1: i32, %arg2: memref<1x4x8x128xf32, #tpu.memory_space<vmem>>, %arg3: memref<4x8x128xf32, #tpu.memory_space<vmem>>, %arg4: memref<1x2x128xf32, #tpu.memory_space<vmem>>) attributes {dimension_semantics = [#tpu.dimension_semantics<parallel>, #tpu.dimension_semantics<arbitrary>], iteration_bounds = array<i64: 2, 1>, scalar_prefetch = 0 : i64, scratch_operands = 0 : i64, tpu.core_type = #tpu.core_type<tc>, window_params = [{transform_indices = @transform_0, window_bounds = array<i64: 1, 4, 8, 128>}, {pipeline_mode = #tpu.pipeline_mode<synchronous>, transform_indices = @transform_1, window_bounds = array<i64: 4, 8, 128>}, {transform_indices = @transform_2, window_bounds = array<i64: 1, 2, 128>}]} {
    %c0_i32 = arith.constant 0 : i32
    %0 = arith.cmpi eq, %arg1, %c0_i32 : i32
    %1 = arith.extui %0 : i1 to i32
    %c0_i32_0 = arith.constant 0 : i32
    %2 = arith.cmpi ne, %1, %c0_i32_0 : i32
    scf.if %2 {
      %cst_24 = arith.constant 0.000000e+00 : f32
      %119 = vector.broadcast %cst_24 : f32 to vector<1x2x128xf32>
      %c0_25 = arith.constant 0 : index
      %c0_26 = arith.constant 0 : index
      %c0_27 = arith.constant 0 : index
      %120 = vector.load %arg4[%c0_25, %c0_26, %c0_27] : memref<1x2x128xf32, #tpu.memory_space<vmem>>, vector<1x2x128xf32>
      tpu.vector_store %arg4[%c0_25, %c0_26, %c0_27], %119 {strides = array<i32>} : memref<1x2x128xf32, #tpu.memory_space<vmem>>, vector<1x2x128xf32>,
    } else {
    }
    %c0 = arith.constant 0 : index
    %c0_1 = arith.constant 0 : index
    %c0_2 = arith.constant 0 : index
    %c0_3 = arith.constant 0 : index
    %3 = vector.load %arg2[%c0, %c0_1, %c0_2, %c0_3] : memref<1x4x8x128xf32, #tpu.memory_space<vmem>>, vector<1x4x8x128xf32>
    %4 = vector.shape_cast %3 : vector<1x4x8x128xf32> to vector<4x8x128xf32>
    %c8_i32 = arith.constant 8 : i32
    %5 = arith.muli %arg1, %c8_i32 : i32
    %6 = tpu.assume_multiple %5, 8 : i32
    %c0_4 = arith.constant 0 : index
    %7 = arith.index_cast %6 : i32 to index
    %c0_5 = arith.constant 0 : index
    %8 = vector.load %arg3[%c0_4, %7, %c0_5] : memref<4x8x128xf32, #tpu.memory_space<vmem>>, vector<4x8x128xf32>
    %9 = arith.subf %4, %8 : vector<4x8x128xf32>
    %10 = math.absf %9 : vector<4x8x128xf32>
    %11 = vector.extract_strided_slice %10 {offsets = [0, 0, 0], sizes = [1, 8, 128], strides = [1, 1, 1]} : vector<4x8x128xf32> to vector<1x8x128xf32>
    %12 = vector.shape_cast %11 : vector<1x8x128xf32> to vector<8x128xf32>
    %13 = vector.extract_strided_slice %10 {offsets = [1, 0, 0], sizes = [1, 8, 128], strides = [1, 1, 1]} : vector<4x8x128xf32> to vector<1x8x128xf32>
    %14 = vector.shape_cast %13 : vector<1x8x128xf32> to vector<8x128xf32>
    %15 = arith.addf %12, %14 : vector<8x128xf32>
    %16 = vector.extract_strided_slice %10 {offsets = [2, 0, 0], sizes = [1, 8, 128], strides = [1, 1, 1]} : vector<4x8x128xf32> to vector<1x8x128xf32>
    %17 = vector.shape_cast %16 : vector<1x8x128xf32> to vector<8x128xf32>
    %18 = arith.addf %15, %17 : vector<8x128xf32>
    %19 = vector.extract_strided_slice %10 {offsets = [3, 0, 0], sizes = [1, 8, 128], strides = [1, 1, 1]} : vector<4x8x128xf32> to vector<1x8x128xf32>
    %20 = vector.shape_cast %19 : vector<1x8x128xf32> to vector<8x128xf32>
    %21 = arith.addf %18, %20 : vector<8x128xf32>
    %22 = vector.extract_strided_slice %4 {offsets = [0, 0, 0], sizes = [1, 8, 128], strides = [1, 1, 1]} : vector<4x8x128xf32> to vector<1x8x128xf32>
    %23 = vector.shape_cast %22 : vector<1x8x128xf32> to vector<8x128xf32>
    %24 = vector.extract_strided_slice %4 {offsets = [2, 0, 0], sizes = [1, 8, 128], strides = [1, 1, 1]} : vector<4x8x128xf32> to vector<1x8x128xf32>
    %25 = vector.shape_cast %24 : vector<1x8x128xf32> to vector<8x128xf32>
    %cst = arith.constant 5.000000e-01 : f32
    %26 = vector.broadcast %cst : f32 to vector<8x128xf32>
    %27 = arith.mulf %26, %25 : vector<8x128xf32>
    %28 = arith.subf %23, %27 : vector<8x128xf32>
    %29 = vector.extract_strided_slice %4 {offsets = [0, 0, 0], sizes = [1, 8, 128], strides = [1, 1, 1]} : vector<4x8x128xf32> to vector<1x8x128xf32>
    %30 = vector.shape_cast %29 : vector<1x8x128xf32> to vector<8x128xf32>
    %31 = vector.extract_strided_slice %4 {offsets = [2, 0, 0], sizes = [1, 8, 128], strides = [1, 1, 1]} : vector<4x8x128xf32> to vector<1x8x128xf32>
    %32 = vector.shape_cast %31 : vector<1x8x128xf32> to vector<8x128xf32>
    %cst_6 = arith.constant 5.000000e-01 : f32
    %33 = vector.broadcast %cst_6 : f32 to vector<8x128xf32>
    %34 = arith.mulf %33, %32 : vector<8x128xf32>
    %35 = arith.addf %30, %34 : vector<8x128xf32>
    %36 = vector.extract_strided_slice %4 {offsets = [1, 0, 0], sizes = [1, 8, 128], strides = [1, 1, 1]} : vector<4x8x128xf32> to vector<1x8x128xf32>
    %37 = vector.shape_cast %36 : vector<1x8x128xf32> to vector<8x128xf32>
    %38 = vector.extract_strided_slice %4 {offsets = [3, 0, 0], sizes = [1, 8, 128], strides = [1, 1, 1]} : vector<4x8x128xf32> to vector<1x8x128xf32>
    %39 = vector.shape_cast %38 : vector<1x8x128xf32> to vector<8x128xf32>
    %cst_7 = arith.constant 5.000000e-01 : f32
    %40 = vector.broadcast %cst_7 : f32 to vector<8x128xf32>
    %41 = arith.mulf %40, %39 : vector<8x128xf32>
    %42 = arith.subf %37, %41 : vector<8x128xf32>
    %43 = vector.extract_strided_slice %4 {offsets = [1, 0, 0], sizes = [1, 8, 128], strides = [1, 1, 1]} : vector<4x8x128xf32> to vector<1x8x128xf32>
    %44 = vector.shape_cast %43 : vector<1x8x128xf32> to vector<8x128xf32>
    %45 = vector.extract_strided_slice %4 {offsets = [3, 0, 0], sizes = [1, 8, 128], strides = [1, 1, 1]} : vector<4x8x128xf32> to vector<1x8x128xf32>
    %46 = vector.shape_cast %45 : vector<1x8x128xf32> to vector<8x128xf32>
    %cst_8 = arith.constant 5.000000e-01 : f32
    %47 = vector.broadcast %cst_8 : f32 to vector<8x128xf32>
    %48 = arith.mulf %47, %46 : vector<8x128xf32>
    %49 = arith.addf %44, %48 : vector<8x128xf32>
    %50 = vector.extract_strided_slice %8 {offsets = [0, 0, 0], sizes = [1, 8, 128], strides = [1, 1, 1]} : vector<4x8x128xf32> to vector<1x8x128xf32>
    %51 = vector.shape_cast %50 : vector<1x8x128xf32> to vector<8x128xf32>
    %52 = vector.extract_strided_slice %8 {offsets = [2, 0, 0], sizes = [1, 8, 128], strides = [1, 1, 1]} : vector<4x8x128xf32> to vector<1x8x128xf32>
    %53 = vector.shape_cast %52 : vector<1x8x128xf32> to vector<8x128xf32>
    %cst_9 = arith.constant 5.000000e-01 : f32
    %54 = vector.broadcast %cst_9 : f32 to vector<8x128xf32>
    %55 = arith.mulf %54, %53 : vector<8x128xf32>
    %56 = arith.subf %51, %55 : vector<8x128xf32>
    %57 = vector.extract_strided_slice %8 {offsets = [0, 0, 0], sizes = [1, 8, 128], strides = [1, 1, 1]} : vector<4x8x128xf32> to vector<1x8x128xf32>
    %58 = vector.shape_cast %57 : vector<1x8x128xf32> to vector<8x128xf32>
    %59 = vector.extract_strided_slice %8 {offsets = [2, 0, 0], sizes = [1, 8, 128], strides = [1, 1, 1]} : vector<4x8x128xf32> to vector<1x8x128xf32>
    %60 = vector.shape_cast %59 : vector<1x8x128xf32> to vector<8x128xf32>
    %cst_10 = arith.constant 5.000000e-01 : f32
    %61 = vector.broadcast %cst_10 : f32 to vector<8x128xf32>
    %62 = arith.mulf %61, %60 : vector<8x128xf32>
    %63 = arith.addf %58, %62 : vector<8x128xf32>
    %64 = vector.extract_strided_slice %8 {offsets = [1, 0, 0], sizes = [1, 8, 128], strides = [1, 1, 1]} : vector<4x8x128xf32> to vector<1x8x128xf32>
    %65 = vector.shape_cast %64 : vector<1x8x128xf32> to vector<8x128xf32>
    %66 = vector.extract_strided_slice %8 {offsets = [3, 0, 0], sizes = [1, 8, 128], strides = [1, 1, 1]} : vector<4x8x128xf32> to vector<1x8x128xf32>
    %67 = vector.shape_cast %66 : vector<1x8x128xf32> to vector<8x128xf32>
    %cst_11 = arith.constant 5.000000e-01 : f32
    %68 = vector.broadcast %cst_11 : f32 to vector<8x128xf32>
    %69 = arith.mulf %68, %67 : vector<8x128xf32>
    %70 = arith.subf %65, %69 : vector<8x128xf32>
    %71 = vector.extract_strided_slice %8 {offsets = [1, 0, 0], sizes = [1, 8, 128], strides = [1, 1, 1]} : vector<4x8x128xf32> to vector<1x8x128xf32>
    %72 = vector.shape_cast %71 : vector<1x8x128xf32> to vector<8x128xf32>
    %73 = vector.extract_strided_slice %8 {offsets = [3, 0, 0], sizes = [1, 8, 128], strides = [1, 1, 1]} : vector<4x8x128xf32> to vector<1x8x128xf32>
    %74 = vector.shape_cast %73 : vector<1x8x128xf32> to vector<8x128xf32>
    %cst_12 = arith.constant 5.000000e-01 : f32
    %75 = vector.broadcast %cst_12 : f32 to vector<8x128xf32>
    %76 = arith.mulf %75, %74 : vector<8x128xf32>
    %77 = arith.addf %72, %76 : vector<8x128xf32>
    %78 = arith.subf %35, %28 : vector<8x128xf32>
    %79 = arith.subf %49, %42 : vector<8x128xf32>
    %80 = arith.mulf %78, %79 : vector<8x128xf32>
    %81 = arith.subf %63, %56 : vector<8x128xf32>
    %82 = arith.subf %77, %70 : vector<8x128xf32>
    %83 = arith.mulf %81, %82 : vector<8x128xf32>
    %84 = arith.minimumf %35, %63 : vector<8x128xf32>
    %85 = arith.maximumf %28, %56 : vector<8x128xf32>
    %86 = arith.subf %84, %85 : vector<8x128xf32>
    %cst_13 = arith.constant 0.000000e+00 : f32
    %87 = vector.broadcast %cst_13 : f32 to vector<8x128xf32>
    %88 = arith.maximumf %86, %87 : vector<8x128xf32>
    %89 = arith.minimumf %49, %77 : vector<8x128xf32>
    %90 = arith.maximumf %42, %70 : vector<8x128xf32>
    %91 = arith.subf %89, %90 : vector<8x128xf32>
    %cst_14 = arith.constant 0.000000e+00 : f32
    %92 = vector.broadcast %cst_14 : f32 to vector<8x128xf32>
    %93 = arith.maximumf %91, %92 : vector<8x128xf32>
    %94 = arith.mulf %88, %93 : vector<8x128xf32>
    %95 = arith.addf %80, %83 : vector<8x128xf32>
    %96 = arith.subf %95, %94 : vector<8x128xf32>
    %97 = arith.maximumf %35, %63 : vector<8x128xf32>
    %98 = arith.minimumf %28, %56 : vector<8x128xf32>
    %99 = arith.subf %97, %98 : vector<8x128xf32>
    %100 = arith.maximumf %49, %77 : vector<8x128xf32>
    %101 = arith.minimumf %42, %70 : vector<8x128xf32>
    %102 = arith.subf %100, %101 : vector<8x128xf32>
    %103 = arith.mulf %99, %102 : vector<8x128xf32>
    %104 = arith.divf %94, %96 : vector<8x128xf32>
    %105 = arith.subf %103, %96 : vector<8x128xf32>
    %106 = arith.divf %105, %103 : vector<8x128xf32>
    %107 = arith.subf %104, %106 : vector<8x128xf32>
    %cst_15 = arith.constant 1.000000e+00 : f32
    %108 = vector.broadcast %cst_15 : f32 to vector<8x128xf32>
    %109 = arith.subf %108, %107 : vector<8x128xf32>
    %cst_16 = arith.constant dense<0.000000e+00> : vector<128xf32>
    %110 = vector.multi_reduction <add>, %21, %cst_16 [0] : vector<8x128xf32> to vector<128xf32>
    %111 = vector.shape_cast %110 : vector<128xf32> to vector<1x128xf32>
    %cst_17 = arith.constant dense<0.000000e+00> : vector<128xf32>
    %112 = vector.multi_reduction <add>, %109, %cst_17 [0] : vector<8x128xf32> to vector<128xf32>
    %113 = vector.shape_cast %112 : vector<128xf32> to vector<1x128xf32>
    %114 = tpu.concatenate %111, %113 in 0 : vector<1x128xf32>, vector<1x128xf32> -> vector<2x128xf32>
    %c0_18 = arith.constant 0 : index
    %c0_19 = arith.constant 0 : index
    %c0_20 = arith.constant 0 : index
    %115 = vector.load %arg4[%c0_18, %c0_19, %c0_20] : memref<1x2x128xf32, #tpu.memory_space<vmem>>, vector<1x2x128xf32>
    %116 = vector.shape_cast %114 : vector<2x128xf32> to vector<1x2x128xf32>
    %117 = arith.addf %115, %116 : vector<1x2x128xf32>
    %c0_21 = arith.constant 0 : index
    %c0_22 = arith.constant 0 : index
    %c0_23 = arith.constant 0 : index
    %118 = vector.load %arg4[%c0_21, %c0_22, %c0_23] : memref<1x2x128xf32, #tpu.memory_space<vmem>>, vector<1x2x128xf32>
    tpu.vector_store %arg4[%c0_21, %c0_22, %c0_23], %117 {strides = array<i32>} : memref<1x2x128xf32, #tpu.memory_space<vmem>>, vector<1x2x128xf32>,
    return
  }
  func.func @transform_0(%arg0: i32, %arg1: i32) -> (i32, i32, i32, i32) {
    %c0_i32 = arith.constant 0 : i32
    %c0_i32_0 = arith.constant 0 : i32
    %c0_i32_1 = arith.constant 0 : i32
    return %arg0, %c0_i32, %arg1, %c0_i32_0 : i32, i32, i32, i32
  }
  func.func @transform_1(%arg0: i32, %arg1: i32) -> (i32, i32, i32) {
    %c0_i32 = arith.constant 0 : i32
    %c0_i32_0 = arith.constant 0 : i32
    %c0_i32_1 = arith.constant 0 : i32
    %c0_i32_2 = arith.constant 0 : i32
    return %c0_i32, %c0_i32_0, %c0_i32_1 : i32, i32, i32
  }
  func.func @transform_2(%arg0: i32, %arg1: i32) -> (i32, i32, i32) {
    %c0_i32 = arith.constant 0 : i32
    %c0_i32_0 = arith.constant 0 : i32
    %c0_i32_1 = arith.constant 0 : i32
    return %arg0, %c0_i32, %c0_i32_0 : i32, i32, i32
  }
}

</mosaic_0001>

<bundles_post_ra>
// kernel: vg_box_losses.1
= control target key start
LH: loop header
LB: loop body
LE: loop exit
PB: predicated region body
PF: predicated region fallthrough
CT: control target
= control target key end

     0   :  { %s400_s9 = smov 0   ;;  %s402_s10 = smov 0   ;;  %s450_s0 = inlined_call_operand.vmem [shape: f32[2,4,8,128], index: 0, kind: input, shape index: {}]   ;;  %s451_s1 = inlined_call_operand.vmem [shape: f32[4,8,128], index: 1, kind: input, shape index: {}]   ;;  %s452_s2 = inlined_call_operand.vmem [shape: f32[2,2,128], index: 2, kind: output, shape index: {}]  }
   0x1   :  { %s404_s11 = smov 0  }
   0x2 LB: > { %s24_s12 = sadd.s32 1, %s378_s10  ;;  %p324_p0 = scmp.ge.s32.totalorder %s382_s11, 1  ;;  %s382_s11 = sphi %s404_s11, %s12_s11   ;;  %s378_s10 = sphi %s402_s10, %s454_s10   ;;  %s374_s9 = sphi %s400_s9, %s453_s9  }
   0x3   : > { %p26_p1 = scmp.ge.s32.totalorder %s24_s12, 2  ;;  %p129_p2 = scmp.lt.s32.totalorder %s382_s11, 3 }
   0x5   : > { %s456_s12 = smov (%p26_p1, %s24_s12), 0  ;;  %p130_p3 = pnand %p324_p0, %p129_p2 }
   0x6   : > { %p153_p4 = scmp.lt.s32.totalorder (!%p130_p3), %s374_s9, 1  ;;  %v178_v0 = vld [vmem:[%s451_s1 + $0x10] sm:$0xff] (!%p130_p3)  ;;  %v179_v1 = vld [vmem:[%s451_s1 + $0x18] sm:$0xff] (!%p130_p3)  ;;  %v176_v4 = vld [vmem:[%s451_s1] sm:$0xff] (!%p130_p3)  ;;  %v384_v6 = vmov (!%p130_p3), 0.0   ;;  %vm246_vm0 = vcmask (!%p130_p3), 1040384  }
   0x7   : > { %133 = sbr.rel (%p130_p3) target bundleno = 66 (0x42), region = 28  ;;  %v197_v2 = vmul.f32 (!%p130_p3), 0.5, %v178_v0  ;;  %v200_v3 = vmul.f32 (!%p130_p3), 0.5, %v179_v1  ;;  %v177_v5 = vld [vmem:[%s451_s1 + $0x8] sm:$0xff] (!%p130_p3) }
   0x9   : > { %v198_v10 = vsub.f32 (!%p130_p3), %v176_v4, %v197_v2  ;;  %v199_v11 = vadd.f32 (!%p130_p3), %v197_v2, %v176_v4  ;;  %v201_v12 = vsub.f32 (!%p130_p3), %v177_v5, %v200_v3  ;;  %v202_v17 = vadd.f32 (!%p130_p3), %v200_v3, %v177_v5 }
   0xb   : > { %v206_v20 = vsub.f32 (!%p130_p3), %v199_v11, %v198_v10  ;;  %v207_v21 = vsub.f32 (!%p130_p3), %v202_v17, %v201_v12 }
   0xd   : > { %v208_v34 = vmul.f32 (!%p130_p3), %v207_v21, %v206_v20 }
   0xe   : > { %s458_s9 = smov (!%p153_p4, %s374_s9), 1 }
   0xf   : > { %s330_s21 = sshll.u32 %s458_s9, 5  ;;  %s327_s22 = sshll.u32 %s458_s9, 1 }
  0x10   : > { %s160_s25 = scalar_lea.vmem %s450_s0, %s330_s21  ;;  %s436_s28 = scalar_lea.vmem %s452_s2, %s327_s22 }
  0x11   : > { %169 = vst [vmem:[%s436_s28] sm:$0x3] %v384_v6  ;;  %v170_v7 = vld [vmem:[%s160_s25] sm:$0xff]  ;;  %v171_v8 = vld [vmem:[%s160_s25 + $0x8] sm:$0xff]  ;;  %v172_v9 = vld [vmem:[%s160_s25 + $0x10] sm:$0xff] }
  0x12   : > { %v173_v13 = vld [vmem:[%s160_s25 + $0x18] sm:$0xff]  ;;  %v180_v14 = vsub.f32 %v170_v7, %v176_v4  ;;  %v181_v15 = vsub.f32 %v171_v8, %v177_v5  ;;  %v191_v16 = vmul.f32 0.5, %v172_v9  ;;  %v182_v22 = vsub.f32 %v172_v9, %v178_v0 }
  0x13   : > { %v194_v18 = vmul.f32 0.5, %v173_v13  ;;  %v183_v41 = vsub.f32 %v173_v13, %v179_v1 }
  0x14   : > { %v192_v19 = vsub.f32 %v170_v7, %v191_v16  ;;  %v193_v23 = vadd.f32 %v191_v16, %v170_v7  ;;  %v184_v26 = vand.u32 2147483647, %v180_v14  ;;  %v185_v27 = vand.u32 2147483647, %v181_v15 }
  0x15   : > { %v195_v24 = vsub.f32 %v171_v8, %v194_v18  ;;  %v196_v25 = vadd.f32 %v194_v18, %v171_v8  ;;  %v186_v44 = vand.u32 2147483647, %v182_v22  ;;  %v187_v52 = vand.u32 2147483647, %v183_v41 }
  0x16   : > { %v210_v28 = vmax.f32 %v192_v19, %v198_v10  ;;  %v221_v29 = vmin.f32 %v192_v19, %v198_v10  ;;  %v203_v30 = vsub.f32 %v193_v23, %v192_v19  ;;  %v209_v32 = vmin.f32 %v193_v23, %v199_v11 }
  0x17   : > { %v204_v31 = vsub.f32 %v196_v25, %v195_v24  ;;  %v213_v33 = vmin.f32 %v196_v25, %v202_v17  ;;  %v214_v35 = vmax.f32 %v195_v24, %v201_v12  ;;  %v220_v36 = vmax.f32 %v193_v23, %v199_v11 }
  0x18   : > { %v223_v37 = vmax.f32 %v196_v25, %v202_v17  ;;  %v211_v39 = vsub.f32 %v209_v32, %v210_v28  ;;  %v224_v40 = vmin.f32 %v195_v24, %v201_v12  ;;  %v188_v45 = vadd.f32 %v185_v27, %v184_v26  ;;  %v248_v11 = vld [vmem:[%s436_s28] sm:$0x3] }
  0x19   : > { %v205_v38 = vmul.f32 %v204_v31, %v203_v30  ;;  %v215_v42 = vsub.f32 %v213_v33, %v214_v35  ;;  %v222_v43 = vsub.f32 %v220_v36, %v221_v29 }
  0x1a   : > { %v212_v46 = vmax.f32 %v211_v39, 0.0  ;;  %v225_v47 = vsub.f32 %v223_v37, %v224_v40  ;;  %v189_v53 = vadd.f32 %v188_v45, %v186_v44 }
  0x1b   : > { %v216_v48 = vmax.f32 %v215_v42, 0.0  ;;  %v218_v49 = vadd.f32 %v208_v34, %v205_v38 }
  0x1c   : > { %v226_v50 = vmul.f32 %v225_v47, %v222_v43  ;;  %v190_v55 = vadd.f32 %v189_v53, %v187_v52 }
  0x1d   : > { %v217_v51 = vmul.f32 %v216_v48, %v212_v46 }
  0x1e   : > { %356 = vrcp.f32 %v226_v50  ;;  %v234_v56 = vrot.slane %v190_v55, 4 }
  0x1f   : > { %v219_v54 = vsub.f32 %v218_v49, %v217_v51 }
  0x20   : > { %v235_v60 = vadd.f32 %v234_v56, %v190_v55 }
  0x21   : > { %358 = vrcp.f32 %v219_v54  ;;  %v229_v57 = vsub.f32 %v226_v50, %v219_v54 }
  0x22   : > { %v236_v0 = vrot.slane %v235_v60, 2 }
  0x24   : > { %v237_v2 = vadd.f32 %v236_v0, %v235_v60 }
  0x26   : > { %v238_v5 = vrot.slane %v237_v2, 1 }
  0x28   : > { %v357_v58 = vpop.eup %356  ;;  %v239_v8 = vadd.f32 %v238_v5, %v237_v2 }
  0x29   : > { %v231_v59 = vmul.f32 %v357_v58, %v229_v57 }
  0x2b   : > { %v359_v61 = vpop.eup %358 }
  0x2c   : > { %v228_v62 = vmul.f32 %v359_v61, %v217_v51 }
  0x2e   : > { %v232_v63 = vsub.f32 %v228_v62, %v231_v59 }
  0x30   : > { %v233_v1 = vsub.f32 1.0, %v232_v63 }
  0x32   : > { %v240_v3 = vrot.slane %v233_v1, 4 }
  0x34   : > { %v241_v4 = vadd.f32 %v240_v3, %v233_v1 }
  0x36   : > { %v242_v6 = vrot.slane %v241_v4, 2 }
  0x38   : > { %v243_v7 = vadd.f32 %v242_v6, %v241_v4 }
  0x3a   : > { %v244_v9 = vrot.slane %v243_v7, 1 }
  0x3c   : > { %v245_v10 = vadd.f32 %v244_v9, %v243_v7 }
  0x3e   : > { %v247_v12 = vsel %vm246_vm0, %v239_v8, %v245_v10 }
  0x3f   : > { %v249_v13 = vadd.f32 %v248_v11, %v247_v12 }
  0x41   : > { %250 = vst [vmem:[%s436_s28] sm:$0x3] %v249_v13 }
  0x42 PF: > { %s12_s11 = sadd.s32 1, %s382_s11   ;;  %s453_s9 = smov %s378_s10 }
  0x43   : > { %p9_p5 = scmp.ge.s32.totalorder %s12_s11, 4   ;;  %s454_s10 = smov %s456_s12 }
  0x45   :  { %11 = sbr.rel (!%p9_p5) target bundleno = 2 (0x2), region = 63 }

</bundles_post_ra>
